<compile_context>
chip_gen: v7x
topology: tpu7x:2x2x1
jax: 0.10.0
libtpu: 0.0.40
codegen_flags: <defaults>
</compile_context>

<pallas_src>
import math
import numpy as np
import jax
import jax.numpy as jnp
from jax.experimental import pallas as pl
from jax.experimental.pallas import tpu as pltpu

BIG_NEG = -1e30  # additive mask value (stands in for -inf; avoids NaN rows)


# ---------------------------------------------------------------------------
# Fused encoder-layer kernel
# ---------------------------------------------------------------------------
def _make_encoder_layer_kernel(S, E, H):
    Dh = E // H

    def kernel(x_ref, mask_ref, qkv_w_ref, qkv_b_ref, wo_ref,
               bn1_s_ref, bn1_h_ref, fc1_w_ref, fc1_b_ref,
               fc2_w_ref, fc2_b_ref, bn2_s_ref, bn2_h_ref, o_ref):
        x = x_ref[0]                                   # (S, E)  f32
        add_mask = mask_ref[0]                         # (1, S)  f32 additive (0 / BIG_NEG)

        # ---- fused QKV projection (1/sqrt(Dh) pre-folded into the Q slice) ----
        xb = x.astype(jnp.bfloat16)
        qkv = jnp.dot(xb, qkv_w_ref[...],
                      preferred_element_type=jnp.float32) + qkv_b_ref[...]   # (S, 3E) f32
        q = qkv[:, 0 * E:1 * E]
        k = qkv[:, 1 * E:2 * E]
        v = qkv[:, 2 * E:3 * E]

        # ---- multi-head attention + fused output projection ----
        # out-proj fused per head: concat_h(ctx_h) @ Wo == sum_h ctx_h @ Wo_h
        attn = jnp.zeros((S, E), jnp.float32)
        for h in range(H):                             # static unroll over heads
            sl = slice(h * Dh, (h + 1) * Dh)
            qh = q[:, sl].astype(jnp.bfloat16)         # (S, Dh)
            kh = k[:, sl].astype(jnp.bfloat16)         # (S, Dh)
            vh = v[:, sl].astype(jnp.bfloat16)         # (S, Dh)

            s = jax.lax.dot_general(                   # q @ k^T (scale already folded in)
                qh, kh, (((1,), (1,)), ((), ())),
                preferred_element_type=jnp.float32)    # (S, S) f32
            s = s + add_mask                           # key_padding_mask (broadcast over rows)
            s = s - jnp.max(s, axis=-1, keepdims=True)
            e = jnp.exp(s)
            p = e * pl.reciprocal(jnp.sum(e, axis=-1, keepdims=True), approx=True)
            # TODO(synk): attention dropout is identity (eval-mode semantics).

            ctx = jnp.dot(p.astype(jnp.bfloat16), vh,
                          preferred_element_type=jnp.float32)          # (S, Dh)
            attn = attn + jnp.dot(ctx.astype(jnp.bfloat16), wo_ref[h],
                                  preferred_element_type=jnp.float32)  # (S, E)

        # ---- residual + folded BatchNorm1d (eval); out-proj bias folded into shift ----
        skip = (x + attn) * bn1_s_ref[...] + bn1_h_ref[...]            # (S, E) f32

        # ---- FFN: fc1 + ReLU + fc2 + ReLU, residual + folded BatchNorm1d ----
        h1 = jnp.dot(skip.astype(jnp.bfloat16), fc1_w_ref[...],
                     preferred_element_type=jnp.float32) + fc1_b_ref[...]
        h1 = jnp.maximum(h1, 0.0)
        h2 = jnp.dot(h1.astype(jnp.bfloat16), fc2_w_ref[...],
                     preferred_element_type=jnp.float32) + fc2_b_ref[...]
        h2 = jnp.maximum(h2, 0.0)
        # TODO(synk): dropout on fc2 output is identity (eval-mode semantics).
        out = (skip + h2) * bn2_s_ref[...] + bn2_h_ref[...]

        o_ref[0] = out.astype(o_ref.dtype)

    return kernel


def encoder_layer_forward(x, key_padding_mask, p, num_heads):
    """x: (B, S, E) f32; key_padding_mask: (B, S) bool (True = padding / ignore key)."""
    B, S, E = x.shape
    H = num_heads
    Dh = E // H
    F = p["fc1_w"].shape[1]

    add_mask = jnp.where(key_padding_mask, BIG_NEG, 0.0).astype(jnp.float32)
    add_mask = add_mask.reshape(B, 1, S)

    return pl.pallas_call(
        _make_encoder_layer_kernel(S, E, H),
        out_shape=jax.ShapeDtypeStruct((B, S, E), jnp.float32),
        grid=(B,),
        in_specs=[
            pl.BlockSpec((1, S, E), lambda b: (b, 0, 0)),      # x
            pl.BlockSpec((1, 1, S), lambda b: (b, 0, 0)),      # additive key-padding mask
            pl.BlockSpec((E, 3 * E), lambda b: (0, 0)),        # fused QKV weight (bf16)
            pl.BlockSpec((1, 3 * E), lambda b: (0, 0)),        # fused QKV bias (f32)
            pl.BlockSpec((H, Dh, E), lambda b: (0, 0, 0)),     # out-proj weight, per-head (bf16)
            pl.BlockSpec((1, E), lambda b: (0, 0)),            # bn1 scale (folded)
            pl.BlockSpec((1, E), lambda b: (0, 0)),            # bn1 shift (folded, incl. out-proj bias)
            pl.BlockSpec((E, F), lambda b: (0, 0)),            # fc1 weight (bf16)
            pl.BlockSpec((1, F), lambda b: (0, 0)),            # fc1 bias
            pl.BlockSpec((F, E), lambda b: (0, 0)),            # fc2 weight (bf16)
            pl.BlockSpec((1, E), lambda b: (0, 0)),            # fc2 bias
            pl.BlockSpec((1, E), lambda b: (0, 0)),            # bn2 scale (folded)
            pl.BlockSpec((1, E), lambda b: (0, 0)),            # bn2 shift (folded)
        ],
        out_specs=pl.BlockSpec((1, S, E), lambda b: (b, 0, 0)),
        compiler_params=pltpu.CompilerParams(
            dimension_semantics=("parallel",)),                # megacore sharding
    )(x, add_mask, p["qkv_w"], p["qkv_b"], p["wo"],
      p["bn1_scale"], p["bn1_shift"], p["fc1_w"], p["fc1_b"],
      p["fc2_w"], p["fc2_b"], p["bn2_scale"], p["bn2_shift"])


# ---------------------------------------------------------------------------
# Deterministic parameter init (kernel params + f32 reference params)
# ---------------------------------------------------------------------------
def init_encoder_layer_params(key, E, H, F, eps=1e-6):
    Dh = E // H
    s = 0.05
    ks = jax.random.split(key, 8)

    def lin(k, fin, fout):
        kw, kb = jax.random.split(k)
        return (jax.random.normal(kw, (fin, fout), jnp.float32) * s,
                jax.random.normal(kb, (fout,), jnp.float32) * s)

    wq, bq = lin(ks[0], E, E)
    wk, bk = lin(ks[1], E, E)
    wv, bv = lin(ks[2], E, E)
    wo, bo = lin(ks[3], E, E)
    fc1_w, fc1_b = lin(ks[4], E, F)
    fc2_w, fc2_b = lin(ks[5], F, E)

    def bn(k):
        k1, k2, k3, k4 = jax.random.split(k, 4)
        gamma = 1.0 + 0.1 * jax.random.normal(k1, (E,), jnp.float32)
        beta = 0.1 * jax.random.normal(k2, (E,), jnp.float32)
        mean = 0.1 * jax.random.normal(k3, (E,), jnp.float32)
        var = 1.0 + 0.1 * jnp.abs(jax.random.normal(k4, (E,), jnp.float32))
        return gamma, beta, mean, var

    bn1 = bn(ks[6])
    bn2 = bn(ks[7])

    # fold 1/sqrt(Dh) into the Q slice, fuse QKV into one matmul
    scale = 1.0 / math.sqrt(Dh)
    qkv_w = jnp.concatenate([wq * scale, wk, wv], axis=1)              # (E, 3E)
    qkv_b = jnp.concatenate([bq * scale, bk, bv]).reshape(1, 3 * E)

    def fold_bn(gamma, beta, mean, var):
        sc = gamma / jnp.sqrt(var + eps)
        sh = beta - mean * sc
        return sc.reshape(1, E), sh.reshape(1, E)

    bn1_s, bn1_h = fold_bn(*bn1)
    bn2_s, bn2_h = fold_bn(*bn2)

    # fold the out-projection bias into the BN1 shift:
    # (x + ctx@Wo + bo) * s1 + h1 == (x + ctx@Wo) * s1 + (h1 + bo * s1)
    bn1_h = bn1_h + bo.reshape(1, E) * bn1_s

    kernel_params = dict(
        qkv_w=qkv_w.astype(jnp.bfloat16),
        qkv_b=qkv_b,
        wo=wo.reshape(H, Dh, E).astype(jnp.bfloat16),
        bn1_scale=bn1_s, bn1_shift=bn1_h,
        fc1_w=fc1_w.astype(jnp.bfloat16), fc1_b=fc1_b.reshape(1, F),
        fc2_w=fc2_w.astype(jnp.bfloat16), fc2_b=fc2_b.reshape(1, E),
        bn2_scale=bn2_s, bn2_shift=bn2_h,
    )
    ref_params = dict(
        wq=wq, bq=bq, wk=wk, bk=bk, wv=wv, bv=bv, wo=wo, bo=bo,
        fc1_w=fc1_w, fc1_b=fc1_b, fc2_w=fc2_w, fc2_b=fc2_b,
        bn1=bn1, bn2=bn2, eps=eps,
    )
    return kernel_params, ref_params


# ---------------------------------------------------------------------------
# Pure-JAX f32 reference (torch semantics) for a numerical sanity check
# ---------------------------------------------------------------------------
def encoder_layer_ref(x, key_padding_mask, rp, H):
    B, S, E = x.shape
    Dh = E // H
    eps = rp["eps"]
    q = x @ rp["wq"] + rp["bq"]
    k = x @ rp["wk"] + rp["bk"]
    v = x @ rp["wv"] + rp["bv"]

    def split(t):
        return t.reshape(B, S, H, Dh).transpose(0, 2, 1, 3)

    qh, kh, vh = split(q), split(k), split(v)
    scores = jnp.einsum("bhqd,bhkd->bhqk", qh, kh) / math.sqrt(Dh)
    scores = scores + jnp.where(key_padding_mask, BIG_NEG, 0.0)[:, None, None, :]
    probs = jax.nn.softmax(scores, axis=-1)
    ctx = jnp.einsum("bhqk,bhkd->bhqd", probs, vh)
    ctx = ctx.transpose(0, 2, 1, 3).reshape(B, S, E)
    attn_out = ctx @ rp["wo"] + rp["bo"]

    def apply_bn(t, bn):
        gamma, beta, mean, var = bn
        return (t - mean) / jnp.sqrt(var + eps) * gamma + beta

    skip = apply_bn(x + attn_out, rp["bn1"])
    h1 = jnp.maximum(skip @ rp["fc1_w"] + rp["fc1_b"], 0.0)
    h2 = jnp.maximum(h1 @ rp["fc2_w"] + rp["fc2_b"], 0.0)
    return apply_bn(skip + h2, rp["bn2"])


# ---------------------------------------------------------------------------
if __name__ == "__main__":
    B, S, E, H, F = 2, 8, 32, 4, 64

    root = jax.random.PRNGKey(0)
    kp, kx = jax.random.split(root)

    kernel_params, ref_params = init_encoder_layer_params(kp, E, H, F)
    x = jax.random.normal(kx, (B, S, E), jnp.float32)
    # key_padding_mask: True = padding token (ignored as attention key)
    key_padding_mask = jnp.zeros((B, S), dtype=bool).at[:, -2:].set(True)

    out = encoder_layer_forward(x, key_padding_mask, kernel_params, num_heads=H)
    out = jax.block_until_ready(out)
    assert out.shape == (B, S, E)

    ref = encoder_layer_ref(x, key_padding_mask, ref_params, H)
    np.testing.assert_allclose(np.asarray(out), np.asarray(ref), atol=3e-2, rtol=3e-2)

    print("KERNEL_OK")
</pallas_src>

<mosaic_0001>
module attributes {stable_mosaic.version = 11 : i64} {
  func.func @kernel(%arg0: i32, %arg1: memref<1x8x32xf32, #tpu.memory_space<vmem>>, %arg2: memref<1x1x8xf32, #tpu.memory_space<vmem>>, %arg3: memref<32x96xbf16, #tpu.memory_space<vmem>>, %arg4: memref<1x96xf32, #tpu.memory_space<vmem>>, %arg5: memref<4x8x32xbf16, #tpu.memory_space<vmem>>, %arg6: memref<1x32xf32, #tpu.memory_space<vmem>>, %arg7: memref<1x32xf32, #tpu.memory_space<vmem>>, %arg8: memref<32x64xbf16, #tpu.memory_space<vmem>>, %arg9: memref<1x64xf32, #tpu.memory_space<vmem>>, %arg10: memref<64x32xbf16, #tpu.memory_space<vmem>>, %arg11: memref<1x32xf32, #tpu.memory_space<vmem>>, %arg12: memref<1x32xf32, #tpu.memory_space<vmem>>, %arg13: memref<1x32xf32, #tpu.memory_space<vmem>>, %arg14: memref<1x8x32xf32, #tpu.memory_space<vmem>>) attributes {dimension_semantics = [#tpu.dimension_semantics<parallel>], iteration_bounds = array<i64: 2>, scalar_prefetch = 0 : i64, scratch_operands = 0 : i64, tpu.core_type = #tpu.core_type<tc>, window_params = [{transform_indices = @transform_0, window_bounds = array<i64: 1, 8, 32>}, {transform_indices = @transform_1, window_bounds = array<i64: 1, 1, 8>}, {pipeline_mode = #tpu.pipeline_mode<synchronous>, transform_indices = @transform_2, window_bounds = array<i64: 32, 96>}, {pipeline_mode = #tpu.pipeline_mode<synchronous>, transform_indices = @transform_3, window_bounds = array<i64: 1, 96>}, {pipeline_mode = #tpu.pipeline_mode<synchronous>, transform_indices = @transform_4, window_bounds = array<i64: 4, 8, 32>}, {pipeline_mode = #tpu.pipeline_mode<synchronous>, transform_indices = @transform_5, window_bounds = array<i64: 1, 32>}, {pipeline_mode = #tpu.pipeline_mode<synchronous>, transform_indices = @transform_6, window_bounds = array<i64: 1, 32>}, {pipeline_mode = #tpu.pipeline_mode<synchronous>, transform_indices = @transform_7, window_bounds = array<i64: 32, 64>}, {pipeline_mode = #tpu.pipeline_mode<synchronous>, transform_indices = @transform_8, window_bounds = array<i64: 1, 64>}, {pipeline_mode = #tpu.pipeline_mode<synchronous>, transform_indices = @transform_9, window_bounds = array<i64: 64, 32>}, {pipeline_mode = #tpu.pipeline_mode<synchronous>, transform_indices = @transform_10, window_bounds = array<i64: 1, 32>}, {pipeline_mode = #tpu.pipeline_mode<synchronous>, transform_indices = @transform_11, window_bounds = array<i64: 1, 32>}, {pipeline_mode = #tpu.pipeline_mode<synchronous>, transform_indices = @transform_12, window_bounds = array<i64: 1, 32>}, {transform_indices = @transform_13, window_bounds = array<i64: 1, 8, 32>}]} {
    %c0 = arith.constant 0 : index
    %c0_0 = arith.constant 0 : index
    %c0_1 = arith.constant 0 : index
    %0 = vector.load %arg1[%c0, %c0_0, %c0_1] : memref<1x8x32xf32, #tpu.memory_space<vmem>>, vector<1x8x32xf32>
    %1 = vector.shape_cast %0 : vector<1x8x32xf32> to vector<8x32xf32>
    %c0_2 = arith.constant 0 : index
    %c0_3 = arith.constant 0 : index
    %c0_4 = arith.constant 0 : index
    %2 = vector.load %arg2[%c0_2, %c0_3, %c0_4] : memref<1x1x8xf32, #tpu.memory_space<vmem>>, vector<1x1x8xf32>
    %3 = vector.shape_cast %2 : vector<1x1x8xf32> to vector<1x8xf32>
    %4 = arith.truncf %1 : vector<8x32xf32> to vector<8x32xbf16>
    %c0_5 = arith.constant 0 : index
    %c0_6 = arith.constant 0 : index
    %5 = vector.load %arg3[%c0_5, %c0_6] : memref<32x96xbf16, #tpu.memory_space<vmem>>, vector<32x96xbf16>
    %cst = arith.constant dense<0.000000e+00> : vector<8x96xf32>
    %6 = tpu.matmul %4, %5, %cst {dimension_numbers = #tpu.dot_dimension_numbers<[1], [0], [0], [1], [0, 0, 1, 1], [], []>} : vector<8x32xbf16>, vector<32x96xbf16>, vector<8x96xf32> -> vector<8x96xf32>
    %c0_7 = arith.constant 0 : index
    %c0_8 = arith.constant 0 : index
    %7 = vector.load %arg4[%c0_7, %c0_8] : memref<1x96xf32, #tpu.memory_space<vmem>>, vector<1x96xf32>
    %8 = vector.broadcast %7 : vector<1x96xf32> to vector<8x96xf32>
    %9 = arith.addf %6, %8 : vector<8x96xf32>
    %10 = vector.extract_strided_slice %9 {offsets = [0, 0], sizes = [8, 32], strides = [1, 1]} : vector<8x96xf32> to vector<8x32xf32>
    %11 = vector.extract_strided_slice %9 {offsets = [0, 32], sizes = [8, 32], strides = [1, 1]} : vector<8x96xf32> to vector<8x32xf32>
    %12 = vector.extract_strided_slice %9 {offsets = [0, 64], sizes = [8, 32], strides = [1, 1]} : vector<8x96xf32> to vector<8x32xf32>
    %cst_9 = arith.constant 0.000000e+00 : f32
    %13 = vector.broadcast %cst_9 : f32 to vector<8x32xf32>
    %14 = vector.extract_strided_slice %10 {offsets = [0, 0], sizes = [8, 8], strides = [1, 1]} : vector<8x32xf32> to vector<8x8xf32>
    %15 = arith.truncf %14 : vector<8x8xf32> to vector<8x8xbf16>
    %16 = vector.extract_strided_slice %11 {offsets = [0, 0], sizes = [8, 8], strides = [1, 1]} : vector<8x32xf32> to vector<8x8xf32>
    %17 = arith.truncf %16 : vector<8x8xf32> to vector<8x8xbf16>
    %18 = vector.extract_strided_slice %12 {offsets = [0, 0], sizes = [8, 8], strides = [1, 1]} : vector<8x32xf32> to vector<8x8xf32>
    %19 = arith.truncf %18 : vector<8x8xf32> to vector<8x8xbf16>
    %cst_10 = arith.constant dense<0.000000e+00> : vector<8x8xf32>
    %20 = tpu.matmul %15, %17, %cst_10 {dimension_numbers = #tpu.dot_dimension_numbers<[1], [1], [0], [0], [0, 0, 1, 0], [], []>} : vector<8x8xbf16>, vector<8x8xbf16>, vector<8x8xf32> -> vector<8x8xf32>
    %21 = vector.broadcast %3 : vector<1x8xf32> to vector<8x8xf32>
    %22 = arith.addf %20, %21 : vector<8x8xf32>
    %cst_11 = arith.constant dense<0xFF800000> : vector<8xf32>
    %23 = vector.multi_reduction <maximumf>, %22, %cst_11 [1] : vector<8x8xf32> to vector<8xf32>
    %24 = vector.shape_cast %23 : vector<8xf32> to vector<8x1xf32>
    %25 = vector.broadcast %24 : vector<8x1xf32> to vector<8x8xf32>
    %26 = arith.subf %22, %25 : vector<8x8xf32>
    %27 = math.exp %26 : vector<8x8xf32>
    %cst_12 = arith.constant dense<0.000000e+00> : vector<8xf32>
    %28 = vector.multi_reduction <add>, %27, %cst_12 [1] : vector<8x8xf32> to vector<8xf32>
    %29 = vector.shape_cast %28 : vector<8xf32> to vector<8x1xf32>
    %30 = tpu.reciprocal %29 {approx = true} : vector<8x1xf32> -> vector<8x1xf32>
    %31 = vector.broadcast %30 : vector<8x1xf32> to vector<8x8xf32>
    %32 = arith.mulf %27, %31 : vector<8x8xf32>
    %33 = arith.truncf %32 : vector<8x8xf32> to vector<8x8xbf16>
    %cst_13 = arith.constant dense<0.000000e+00> : vector<8x8xf32>
    %34 = tpu.matmul %33, %19, %cst_13 {dimension_numbers = #tpu.dot_dimension_numbers<[1], [0], [0], [1], [0, 0, 1, 1], [], []>} : vector<8x8xbf16>, vector<8x8xbf16>, vector<8x8xf32> -> vector<8x8xf32>
    %35 = arith.truncf %34 : vector<8x8xf32> to vector<8x8xbf16>
    %c0_14 = arith.constant 0 : index
    %c0_15 = arith.constant 0 : index
    %c0_16 = arith.constant 0 : index
    %36 = vector.load %arg5[%c0_14, %c0_15, %c0_16] : memref<4x8x32xbf16, #tpu.memory_space<vmem>>, vector<1x8x32xbf16>
    %37 = vector.shape_cast %36 : vector<1x8x32xbf16> to vector<8x32xbf16>
    %cst_17 = arith.constant dense<0.000000e+00> : vector<8x32xf32>
    %38 = tpu.matmul %35, %37, %cst_17 {dimension_numbers = #tpu.dot_dimension_numbers<[1], [0], [0], [1], [0, 0, 1, 1], [], []>} : vector<8x8xbf16>, vector<8x32xbf16>, vector<8x32xf32> -> vector<8x32xf32>
    %39 = arith.addf %13, %38 : vector<8x32xf32>
    %40 = vector.extract_strided_slice %10 {offsets = [0, 8], sizes = [8, 8], strides = [1, 1]} : vector<8x32xf32> to vector<8x8xf32>
    %41 = arith.truncf %40 : vector<8x8xf32> to vector<8x8xbf16>
    %42 = vector.extract_strided_slice %11 {offsets = [0, 8], sizes = [8, 8], strides = [1, 1]} : vector<8x32xf32> to vector<8x8xf32>
    %43 = arith.truncf %42 : vector<8x8xf32> to vector<8x8xbf16>
    %44 = vector.extract_strided_slice %12 {offsets = [0, 8], sizes = [8, 8], strides = [1, 1]} : vector<8x32xf32> to vector<8x8xf32>
    %45 = arith.truncf %44 : vector<8x8xf32> to vector<8x8xbf16>
    %cst_18 = arith.constant dense<0.000000e+00> : vector<8x8xf32>
    %46 = tpu.matmul %41, %43, %cst_18 {dimension_numbers = #tpu.dot_dimension_numbers<[1], [1], [0], [0], [0, 0, 1, 0], [], []>} : vector<8x8xbf16>, vector<8x8xbf16>, vector<8x8xf32> -> vector<8x8xf32>
    %47 = vector.broadcast %3 : vector<1x8xf32> to vector<8x8xf32>
    %48 = arith.addf %46, %47 : vector<8x8xf32>
    %cst_19 = arith.constant dense<0xFF800000> : vector<8xf32>
    %49 = vector.multi_reduction <maximumf>, %48, %cst_19 [1] : vector<8x8xf32> to vector<8xf32>
    %50 = vector.shape_cast %49 : vector<8xf32> to vector<8x1xf32>
    %51 = vector.broadcast %50 : vector<8x1xf32> to vector<8x8xf32>
    %52 = arith.subf %48, %51 : vector<8x8xf32>
    %53 = math.exp %52 : vector<8x8xf32>
    %cst_20 = arith.constant dense<0.000000e+00> : vector<8xf32>
    %54 = vector.multi_reduction <add>, %53, %cst_20 [1] : vector<8x8xf32> to vector<8xf32>
    %55 = vector.shape_cast %54 : vector<8xf32> to vector<8x1xf32>
    %56 = tpu.reciprocal %55 {approx = true} : vector<8x1xf32> -> vector<8x1xf32>
    %57 = vector.broadcast %56 : vector<8x1xf32> to vector<8x8xf32>
    %58 = arith.mulf %53, %57 : vector<8x8xf32>
    %59 = arith.truncf %58 : vector<8x8xf32> to vector<8x8xbf16>
    %cst_21 = arith.constant dense<0.000000e+00> : vector<8x8xf32>
    %60 = tpu.matmul %59, %45, %cst_21 {dimension_numbers = #tpu.dot_dimension_numbers<[1], [0], [0], [1], [0, 0, 1, 1], [], []>} : vector<8x8xbf16>, vector<8x8xbf16>, vector<8x8xf32> -> vector<8x8xf32>
    %61 = arith.truncf %60 : vector<8x8xf32> to vector<8x8xbf16>
    %c1 = arith.constant 1 : index
    %c0_22 = arith.constant 0 : index
    %c0_23 = arith.constant 0 : index
    %62 = vector.load %arg5[%c1, %c0_22, %c0_23] : memref<4x8x32xbf16, #tpu.memory_space<vmem>>, vector<1x8x32xbf16>
    %63 = vector.shape_cast %62 : vector<1x8x32xbf16> to vector<8x32xbf16>
    %cst_24 = arith.constant dense<0.000000e+00> : vector<8x32xf32>
    %64 = tpu.matmul %61, %63, %cst_24 {dimension_numbers = #tpu.dot_dimension_numbers<[1], [0], [0], [1], [0, 0, 1, 1], [], []>} : vector<8x8xbf16>, vector<8x32xbf16>, vector<8x32xf32> -> vector<8x32xf32>
    %65 = arith.addf %39, %64 : vector<8x32xf32>
    %66 = vector.extract_strided_slice %10 {offsets = [0, 16], sizes = [8, 8], strides = [1, 1]} : vector<8x32xf32> to vector<8x8xf32>
    %67 = arith.truncf %66 : vector<8x8xf32> to vector<8x8xbf16>
    %68 = vector.extract_strided_slice %11 {offsets = [0, 16], sizes = [8, 8], strides = [1, 1]} : vector<8x32xf32> to vector<8x8xf32>
    %69 = arith.truncf %68 : vector<8x8xf32> to vector<8x8xbf16>
    %70 = vector.extract_strided_slice %12 {offsets = [0, 16], sizes = [8, 8], strides = [1, 1]} : vector<8x32xf32> to vector<8x8xf32>
    %71 = arith.truncf %70 : vector<8x8xf32> to vector<8x8xbf16>
    %cst_25 = arith.constant dense<0.000000e+00> : vector<8x8xf32>
    %72 = tpu.matmul %67, %69, %cst_25 {dimension_numbers = #tpu.dot_dimension_numbers<[1], [1], [0], [0], [0, 0, 1, 0], [], []>} : vector<8x8xbf16>, vector<8x8xbf16>, vector<8x8xf32> -> vector<8x8xf32>
    %73 = vector.broadcast %3 : vector<1x8xf32> to vector<8x8xf32>
    %74 = arith.addf %72, %73 : vector<8x8xf32>
    %cst_26 = arith.constant dense<0xFF800000> : vector<8xf32>
    %75 = vector.multi_reduction <maximumf>, %74, %cst_26 [1] : vector<8x8xf32> to vector<8xf32>
    %76 = vector.shape_cast %75 : vector<8xf32> to vector<8x1xf32>
    %77 = vector.broadcast %76 : vector<8x1xf32> to vector<8x8xf32>
    %78 = arith.subf %74, %77 : vector<8x8xf32>
    %79 = math.exp %78 : vector<8x8xf32>
    %cst_27 = arith.constant dense<0.000000e+00> : vector<8xf32>
    %80 = vector.multi_reduction <add>, %79, %cst_27 [1] : vector<8x8xf32> to vector<8xf32>
    %81 = vector.shape_cast %80 : vector<8xf32> to vector<8x1xf32>
    %82 = tpu.reciprocal %81 {approx = true} : vector<8x1xf32> -> vector<8x1xf32>
    %83 = vector.broadcast %82 : vector<8x1xf32> to vector<8x8xf32>
    %84 = arith.mulf %79, %83 : vector<8x8xf32>
    %85 = arith.truncf %84 : vector<8x8xf32> to vector<8x8xbf16>
    %cst_28 = arith.constant dense<0.000000e+00> : vector<8x8xf32>
    %86 = tpu.matmul %85, %71, %cst_28 {dimension_numbers = #tpu.dot_dimension_numbers<[1], [0], [0], [1], [0, 0, 1, 1], [], []>} : vector<8x8xbf16>, vector<8x8xbf16>, vector<8x8xf32> -> vector<8x8xf32>
    %87 = arith.truncf %86 : vector<8x8xf32> to vector<8x8xbf16>
    %c2 = arith.constant 2 : index
    %c0_29 = arith.constant 0 : index
    %c0_30 = arith.constant 0 : index
    %88 = vector.load %arg5[%c2, %c0_29, %c0_30] : memref<4x8x32xbf16, #tpu.memory_space<vmem>>, vector<1x8x32xbf16>
    %89 = vector.shape_cast %88 : vector<1x8x32xbf16> to vector<8x32xbf16>
    %cst_31 = arith.constant dense<0.000000e+00> : vector<8x32xf32>
    %90 = tpu.matmul %87, %89, %cst_31 {dimension_numbers = #tpu.dot_dimension_numbers<[1], [0], [0], [1], [0, 0, 1, 1], [], []>} : vector<8x8xbf16>, vector<8x32xbf16>, vector<8x32xf32> -> vector<8x32xf32>
    %91 = arith.addf %65, %90 : vector<8x32xf32>
    %92 = vector.extract_strided_slice %10 {offsets = [0, 24], sizes = [8, 8], strides = [1, 1]} : vector<8x32xf32> to vector<8x8xf32>
    %93 = arith.truncf %92 : vector<8x8xf32> to vector<8x8xbf16>
    %94 = vector.extract_strided_slice %11 {offsets = [0, 24], sizes = [8, 8], strides = [1, 1]} : vector<8x32xf32> to vector<8x8xf32>
    %95 = arith.truncf %94 : vector<8x8xf32> to vector<8x8xbf16>
    %96 = vector.extract_strided_slice %12 {offsets = [0, 24], sizes = [8, 8], strides = [1, 1]} : vector<8x32xf32> to vector<8x8xf32>
    %97 = arith.truncf %96 : vector<8x8xf32> to vector<8x8xbf16>
    %cst_32 = arith.constant dense<0.000000e+00> : vector<8x8xf32>
    %98 = tpu.matmul %93, %95, %cst_32 {dimension_numbers = #tpu.dot_dimension_numbers<[1], [1], [0], [0], [0, 0, 1, 0], [], []>} : vector<8x8xbf16>, vector<8x8xbf16>, vector<8x8xf32> -> vector<8x8xf32>
    %99 = vector.broadcast %3 : vector<1x8xf32> to vector<8x8xf32>
    %100 = arith.addf %98, %99 : vector<8x8xf32>
    %cst_33 = arith.constant dense<0xFF800000> : vector<8xf32>
    %101 = vector.multi_reduction <maximumf>, %100, %cst_33 [1] : vector<8x8xf32> to vector<8xf32>
    %102 = vector.shape_cast %101 : vector<8xf32> to vector<8x1xf32>
    %103 = vector.broadcast %102 : vector<8x1xf32> to vector<8x8xf32>
    %104 = arith.subf %100, %103 : vector<8x8xf32>
    %105 = math.exp %104 : vector<8x8xf32>
    %cst_34 = arith.constant dense<0.000000e+00> : vector<8xf32>
    %106 = vector.multi_reduction <add>, %105, %cst_34 [1] : vector<8x8xf32> to vector<8xf32>
    %107 = vector.shape_cast %106 : vector<8xf32> to vector<8x1xf32>
    %108 = tpu.reciprocal %107 {approx = true} : vector<8x1xf32> -> vector<8x1xf32>
    %109 = vector.broadcast %108 : vector<8x1xf32> to vector<8x8xf32>
    %110 = arith.mulf %105, %109 : vector<8x8xf32>
    %111 = arith.truncf %110 : vector<8x8xf32> to vector<8x8xbf16>
    %cst_35 = arith.constant dense<0.000000e+00> : vector<8x8xf32>
    %112 = tpu.matmul %111, %97, %cst_35 {dimension_numbers = #tpu.dot_dimension_numbers<[1], [0], [0], [1], [0, 0, 1, 1], [], []>} : vector<8x8xbf16>, vector<8x8xbf16>, vector<8x8xf32> -> vector<8x8xf32>
    %113 = arith.truncf %112 : vector<8x8xf32> to vector<8x8xbf16>
    %c3 = arith.constant 3 : index
    %c0_36 = arith.constant 0 : index
    %c0_37 = arith.constant 0 : index
    %114 = vector.load %arg5[%c3, %c0_36, %c0_37] : memref<4x8x32xbf16, #tpu.memory_space<vmem>>, vector<1x8x32xbf16>
    %115 = vector.shape_cast %114 : vector<1x8x32xbf16> to vector<8x32xbf16>
    %cst_38 = arith.constant dense<0.000000e+00> : vector<8x32xf32>
    %116 = tpu.matmul %113, %115, %cst_38 {dimension_numbers = #tpu.dot_dimension_numbers<[1], [0], [0], [1], [0, 0, 1, 1], [], []>} : vector<8x8xbf16>, vector<8x32xbf16>, vector<8x32xf32> -> vector<8x32xf32>
    %117 = arith.addf %91, %116 : vector<8x32xf32>
    %118 = arith.addf %1, %117 : vector<8x32xf32>
    %c0_39 = arith.constant 0 : index
    %c0_40 = arith.constant 0 : index
    %119 = vector.load %arg6[%c0_39, %c0_40] : memref<1x32xf32, #tpu.memory_space<vmem>>, vector<1x32xf32>
    %120 = vector.broadcast %119 : vector<1x32xf32> to vector<8x32xf32>
    %121 = arith.mulf %118, %120 : vector<8x32xf32>
    %c0_41 = arith.constant 0 : index
    %c0_42 = arith.constant 0 : index
    %122 = vector.load %arg7[%c0_41, %c0_42] : memref<1x32xf32, #tpu.memory_space<vmem>>, vector<1x32xf32>
    %123 = vector.broadcast %122 : vector<1x32xf32> to vector<8x32xf32>
    %124 = arith.addf %121, %123 : vector<8x32xf32>
    %125 = arith.truncf %124 : vector<8x32xf32> to vector<8x32xbf16>
    %c0_43 = arith.constant 0 : index
    %c0_44 = arith.constant 0 : index
    %126 = vector.load %arg8[%c0_43, %c0_44] : memref<32x64xbf16, #tpu.memory_space<vmem>>, vector<32x64xbf16>
    %cst_45 = arith.constant dense<0.000000e+00> : vector<8x64xf32>
    %127 = tpu.matmul %125, %126, %cst_45 {dimension_numbers = #tpu.dot_dimension_numbers<[1], [0], [0], [1], [0, 0, 1, 1], [], []>} : vector<8x32xbf16>, vector<32x64xbf16>, vector<8x64xf32> -> vector<8x64xf32>
    %c0_46 = arith.constant 0 : index
    %c0_47 = arith.constant 0 : index
    %128 = vector.load %arg9[%c0_46, %c0_47] : memref<1x64xf32, #tpu.memory_space<vmem>>, vector<1x64xf32>
    %129 = vector.broadcast %128 : vector<1x64xf32> to vector<8x64xf32>
    %130 = arith.addf %127, %129 : vector<8x64xf32>
    %cst_48 = arith.constant 0.000000e+00 : f32
    %131 = vector.broadcast %cst_48 : f32 to vector<8x64xf32>
    %132 = arith.maximumf %130, %131 : vector<8x64xf32>
    %133 = arith.truncf %132 : vector<8x64xf32> to vector<8x64xbf16>
    %c0_49 = arith.constant 0 : index
    %c0_50 = arith.constant 0 : index
    %134 = vector.load %arg10[%c0_49, %c0_50] : memref<64x32xbf16, #tpu.memory_space<vmem>>, vector<64x32xbf16>
    %cst_51 = arith.constant dense<0.000000e+00> : vector<8x32xf32>
    %135 = tpu.matmul %133, %134, %cst_51 {dimension_numbers = #tpu.dot_dimension_numbers<[1], [0], [0], [1], [0, 0, 1, 1], [], []>} : vector<8x64xbf16>, vector<64x32xbf16>, vector<8x32xf32> -> vector<8x32xf32>
    %c0_52 = arith.constant 0 : index
    %c0_53 = arith.constant 0 : index
    %136 = vector.load %arg11[%c0_52, %c0_53] : memref<1x32xf32, #tpu.memory_space<vmem>>, vector<1x32xf32>
    %137 = vector.broadcast %136 : vector<1x32xf32> to vector<8x32xf32>
    %138 = arith.addf %135, %137 : vector<8x32xf32>
    %cst_54 = arith.constant 0.000000e+00 : f32
    %139 = vector.broadcast %cst_54 : f32 to vector<8x32xf32>
    %140 = arith.maximumf %138, %139 : vector<8x32xf32>
    %141 = arith.addf %124, %140 : vector<8x32xf32>
    %c0_55 = arith.constant 0 : index
    %c0_56 = arith.constant 0 : index
    %142 = vector.load %arg12[%c0_55, %c0_56] : memref<1x32xf32, #tpu.memory_space<vmem>>, vector<1x32xf32>
    %143 = vector.broadcast %142 : vector<1x32xf32> to vector<8x32xf32>
    %144 = arith.mulf %141, %143 : vector<8x32xf32>
    %c0_57 = arith.constant 0 : index
    %c0_58 = arith.constant 0 : index
    %145 = vector.load %arg13[%c0_57, %c0_58] : memref<1x32xf32, #tpu.memory_space<vmem>>, vector<1x32xf32>
    %146 = vector.broadcast %145 : vector<1x32xf32> to vector<8x32xf32>
    %147 = arith.addf %144, %146 : vector<8x32xf32>
    %c0_59 = arith.constant 0 : index
    %c0_60 = arith.constant 0 : index
    %c0_61 = arith.constant 0 : index
    %148 = vector.load %arg14[%c0_59, %c0_60, %c0_61] : memref<1x8x32xf32, #tpu.memory_space<vmem>>, vector<1x8x32xf32>
    %149 = vector.shape_cast %148 : vector<1x8x32xf32> to vector<8x32xf32>
    %150 = vector.shape_cast %147 : vector<8x32xf32> to vector<1x8x32xf32>
    tpu.vector_store %arg14[%c0_59, %c0_60, %c0_61], %150 {strides = array<i32>} : memref<1x8x32xf32, #tpu.memory_space<vmem>>, vector<1x8x32xf32>,
    return
  }
  func.func @transform_0(%arg0: i32) -> (i32, i32, i32) {
    %c0_i32 = arith.constant 0 : i32
    %c0_i32_0 = arith.constant 0 : i32
    %c0_i32_1 = arith.constant 0 : i32
    return %arg0, %c0_i32, %c0_i32_0 : i32, i32, i32
  }
  func.func @transform_1(%arg0: i32) -> (i32, i32, i32) {
    %c0_i32 = arith.constant 0 : i32
    %c0_i32_0 = arith.constant 0 : i32
    %c0_i32_1 = arith.constant 0 : i32
    return %arg0, %c0_i32, %c0_i32_0 : i32, i32, i32
  }
  func.func @transform_2(%arg0: i32) -> (i32, i32) {
    %c0_i32 = arith.constant 0 : i32
    %c0_i32_0 = arith.constant 0 : i32
    %c0_i32_1 = arith.constant 0 : i32
    return %c0_i32, %c0_i32_0 : i32, i32
  }
  func.func @transform_3(%arg0: i32) -> (i32, i32) {
    %c0_i32 = arith.constant 0 : i32
    %c0_i32_0 = arith.constant 0 : i32
    %c0_i32_1 = arith.constant 0 : i32
    return %c0_i32, %c0_i32_0 : i32, i32
  }
  func.func @transform_4(%arg0: i32) -> (i32, i32, i32) {
    %c0_i32 = arith.constant 0 : i32
    %c0_i32_0 = arith.constant 0 : i32
    %c0_i32_1 = arith.constant 0 : i32
    %c0_i32_2 = arith.constant 0 : i32
    return %c0_i32, %c0_i32_0, %c0_i32_1 : i32, i32, i32
  }
  func.func @transform_5(%arg0: i32) -> (i32, i32) {
    %c0_i32 = arith.constant 0 : i32
    %c0_i32_0 = arith.constant 0 : i32
    %c0_i32_1 = arith.constant 0 : i32
    return %c0_i32, %c0_i32_0 : i32, i32
  }
  func.func @transform_6(%arg0: i32) -> (i32, i32) {
    %c0_i32 = arith.constant 0 : i32
    %c0_i32_0 = arith.constant 0 : i32
    %c0_i32_1 = arith.constant 0 : i32
    return %c0_i32, %c0_i32_0 : i32, i32
  }
  func.func @transform_7(%arg0: i32) -> (i32, i32) {
    %c0_i32 = arith.constant 0 : i32
    %c0_i32_0 = arith.constant 0 : i32
    %c0_i32_1 = arith.constant 0 : i32
    return %c0_i32, %c0_i32_0 : i32, i32
  }
  func.func @transform_8(%arg0: i32) -> (i32, i32) {
    %c0_i32 = arith.constant 0 : i32
    %c0_i32_0 = arith.constant 0 : i32
    %c0_i32_1 = arith.constant 0 : i32
    return %c0_i32, %c0_i32_0 : i32, i32
  }
  func.func @transform_9(%arg0: i32) -> (i32, i32) {
    %c0_i32 = arith.constant 0 : i32
    %c0_i32_0 = arith.constant 0 : i32
    %c0_i32_1 = arith.constant 0 : i32
    return %c0_i32, %c0_i32_0 : i32, i32
  }
  func.func @transform_10(%arg0: i32) -> (i32, i32) {
    %c0_i32 = arith.constant 0 : i32
    %c0_i32_0 = arith.constant 0 : i32
    %c0_i32_1 = arith.constant 0 : i32
    return %c0_i32, %c0_i32_0 : i32, i32
  }
  func.func @transform_11(%arg0: i32) -> (i32, i32) {
    %c0_i32 = arith.constant 0 : i32
    %c0_i32_0 = arith.constant 0 : i32
    %c0_i32_1 = arith.constant 0 : i32
    return %c0_i32, %c0_i32_0 : i32, i32
  }
  func.func @transform_12(%arg0: i32) -> (i32, i32) {
    %c0_i32 = arith.constant 0 : i32
    %c0_i32_0 = arith.constant 0 : i32
    %c0_i32_1 = arith.constant 0 : i32
    return %c0_i32, %c0_i32_0 : i32, i32
  }
  func.func @transform_13(%arg0: i32) -> (i32, i32, i32) {
    %c0_i32 = arith.constant 0 : i32
    %c0_i32_0 = arith.constant 0 : i32
    %c0_i32_1 = arith.constant 0 : i32
    return %arg0, %c0_i32, %c0_i32_0 : i32, i32, i32
  }
}

</mosaic_0001>

<bundles_post_ra>
// kernel: tpu_custom_call.1
= control target key start
LH: loop header
LB: loop body
LE: loop exit
PB: predicated region body
PF: predicated region fallthrough
CT: control target
= control target key end

     0   :  { %s2222_s0 = inlined_call_operand.vmem [shape: f32[2,8,32], index: 0, kind: input, shape index: {}]   ;;  %s2223_s1 = inlined_call_operand.vmem [shape: f32[2,1,8], index: 1, kind: input, shape index: {}]   ;;  %s2224_s2 = inlined_call_operand.vmem [shape: bf16[32,96], index: 2, kind: input, shape index: {}]   ;;  %s2225_s3 = inlined_call_operand.vmem [shape: f32[1,96], index: 3, kind: input, shape index: {}]   ;;  %s2226_s4 = inlined_call_operand.vmem [shape: bf16[4,8,32], index: 4, kind: input, shape index: {}]   ;;  %s2227_s5 = inlined_call_operand.vmem [shape: f32[1,32], index: 5, kind: input, shape index: {}]   ;;  %s2228_s6 = inlined_call_operand.vmem [shape: f32[1,32], index: 6, kind: input, shape index: {}]   ;;  %s2229_s7 = inlined_call_operand.hbm [shape: bf16[32,64], index: 7, kind: input, shape index: {}]   ;;  %s2230_s8 = inlined_call_operand.vmem [shape: f32[1,64], index: 8, kind: input, shape index: {}]   ;;  %s2231_s9 = inlined_call_operand.vmem [shape: bf16[64,32], index: 9, kind: input, shape index: {}]   ;;  %s2232_s10 = inlined_call_operand.vmem [shape: f32[1,32], index: 10, kind: input, shape index: {}]   ;;  %s2233_s11 = inlined_call_operand.vmem [shape: f32[1,32], index: 11, kind: input, shape index: {}]   ;;  %s2234_s12 = inlined_call_operand.vmem [shape: f32[1,32], index: 12, kind: input, shape index: {}]   ;;  %s2235_s13 = inlined_call_operand.hbm [shape: f32[2,8,32], index: 13, kind: output, shape index: {}]  }
   0x1   :  { %2242 = sst [smem:[#allocation11_spill]] %s2222_s0 }
   0x2   :  { %18 = vsyncpa [#allocation3], 0 }
   0x3   :  { %19 = vsyncpa [#allocation4], 0 }
   0x4   :  { %21 = vsyncpa [#allocation4 + $0x1], 0  ;;  %s1916_s25 = smov 0   ;;  %s1918_s26 = smov 0  }
   0x5   :  { %s1920_s27 = smov 0   ;;  %s1922_s28 = smov 0  }
   0x6 LB: > { %2243 = sst [smem:[#allocation8_spill]] %s1823_s27  ;;  %s1937_s29 = sadd.s32 4294967295, %s1827_s28   ;;  %s1827_s28 = sphi %s1922_s28, %s2256_s28   ;;  %s1823_s27 = sphi %s1920_s27, %s2261_s27   ;;  %s1819_s26 = sphi %s1918_s26, %s2260_s26   ;;  %s1815_s25 = sphi %s1916_s25, %s2259_s25  }
   0x7   : > { %s1463_s30 = sadd.s32 4294967294, %s1827_s28   ;;  %s1941_s14 = sadd.s32 1, %s1827_s28  }
   0x8   : > { %2244 = sst [smem:[#allocation9_spill]] %s1941_s14  ;;  %s317_s15 = sadd.s32 1, %s1823_s27 }
   0x9   : > { %s314_s16 = ssub.s32 %s1827_s28, %s1941_s14  ;;  %p327_p0 = scmp.ne.s32.totalorder %s1823_s27, %s1819_s26 }
   0xa   : > { %p315_p1 = scmp.eq.s32.totalorder %s314_s16, 0  ;;  %p328_p2 = scmp.eq.s32.totalorder %s1937_s29, 1 }
   0xb   : > { %p333_p3 = scmp.ne.s32.totalorder %s1819_s26, %s1815_s25  ;;  %p334_p4 = scmp.eq.s32.totalorder %s1463_s30, 1 }
   0xc   : > { %s1952_s17 = scalar_select %p315_p1, %s1823_s27, %s317_s15  }
   0xd   : > { %p1954_p5 = por %p328_p2, %p327_p0  ;;  %p1958_p6 = por %p334_p4, %p333_p3 }
   0xe   : > { %2245 = sst [smem:[#allocation10_spill]] %s1952_s17  ;;  %p1464_p7 = scmp.ge.s32.totalorder %s1827_s28, 1 }
   0xf   : > { %s2246_s18 = scalar_select %p1954_p5, 1, 0 }
  0x10   : > { %s2247_s19 = scalar_select %p1958_p6, 1, 0 }
  0x11   : > { %p341_p8 = scmp.lt.s32.totalorder %s1827_s28, 3  ;;  %p2239_p9 = scmp.eq.s32.totalorder %s1937_s29, 0 }
  0x12   : > { %s1829_s21 = smov [#allocation2]   ;;  %s1733_s15 = scalar_lea.hbm %s2229_s7, 256 }
  0x13   : > { %p1965_p10 = pnand %p1464_p7, %p341_p8  ;;  %s368_s22 = sshll.u32 %s1829_s21, 4  ;;  %s369_s22 = int_to_ptr.vmem [resolvable:$true] %s368_s22 }
  0x14   : > { %p1734_p13 = scmp.ne.s32.totalorder %s2229_s7, %s1733_s15  ;;  %p1740_p3 = scmp.lt.u32.totalorder %s1733_s15, %s2229_s7 }
  0x15   : > { %s2248_s20 = scalar_select %p1965_p10, 1, 0 }
  0x16   : > { %p1650_p11 = pneg %p1965_p10 }
  0x18   : > { %p1973_p12 = pnand %p2239_p9, %p1650_p11 }
  0x1a   : > { %p1735_p0 = pneg %p1973_p12 }
  0x1c   : > { %p1736_p1 = pnand %p1735_p0, %p1734_p13 }
  0x1e   : > { %p1737_p2 = pneg %p1736_p1 }
  0x20   : > { %p1742_p4 = pnand %p1740_p3, %p1737_p2 }
  0x22   : > { %1745 = shalt.err (!%p1742_p4)
}
  0x23   : > { %s1746_s14 = scalar_lea.vmem %s369_s22, 256  ;;  %p1754_p9 = scmp.lt.s32.totalorder %s369_s22, %s369_s22 }
  0x24   : > { %p1747_p7 = scmp.ne.s32.totalorder %s369_s22, %s1746_s14  ;;  %p1755_p6 = scmp.lt.s32.totalorder %s1746_s14, %s1746_s14 }
  0x26   : > { %p1749_p8 = pnand %p1747_p7, %p1735_p0  ;;  %p1756_p5 = por %p1755_p6, %p1754_p9 }
  0x28   : > { %p1750_p11 = pneg %p1749_p8 }
  0x2a   : > { %p1757_p10 = pnand %p1756_p5, %p1750_p11 }
  0x2c   : > { %1760 = shalt.err (!%p1757_p10)
}
  0x2d   : > { %s1830_s17 = smov 64   ;;  %s1831_s24 = smov 4  }
  0x2e   : > { %1653 = dma.hbm_to_vmem [thread:$0]  (!%p1973_p12), %s2229_s7, 256, %s369_s22, [#allocation3], %s1830_s17, %s1830_s17, %s1831_s24  }
  0x2f   : > { %p2250_p13 = scmp.ne.s32.totalorder %s2248_s20, 0 }
  0x30   : > { %p2251_p1 = scmp.eq.s32.totalorder (!%p2250_p13), %s1937_s29, 0 }
  0x31   : > { %412 = sbr.rel (%p2250_p13) target bundleno = 3124 (0xc34), region = 72 }
  0x38   : > { %1806 = dma.done.wait (%p2251_p1), [#allocation3], 256   ;;  %p2252_p0 = pmov %p2251_p1 }
  0x39   : > { %p458_p5 = scmp.lt.s32.totalorder %s1937_s29, 1  ;;  %v1832_v0 = vmov 0.0   ;;  %vm1833_vm0 = vmmov 0   ;;  %s2253_s0 = sld [smem:[#allocation11_spill]]  ;;  %v1709_v1 = vld [vmem:[%s2224_s2] sm:$0xff]   ;;  %v1710_v2 = vld [vmem:[%s2224_s2 + $0x8] sm:$0xff]  }
  0x3a   : > { %1808 = vsyncadd (%p2252_p0), [#allocation3], 4294967040  ;;  %1544 = vmatprep.subr.bf16.mxu1 %v1832_v0  ;;  %1548 = vmatprep.mubr.msk.bf16.mxu1 %vm1833_vm0, %v1832_v0  ;;  %vm492_vm1 = vcmask 261120   ;;  %v1471_v5 = vld [vmem:[%s2225_s3] ss:$0 sm:$0xff]  ;;  %s1835_s20 = smov 96  }
  0x3b   : > { %s2004_s27 = scalar_select %p458_p5, %s1937_s29, 1  ;;  %1558 = vmatprep.subr.bf16.mxu0 %v1832_v0  ;;  %1560 = vmatprep.mubr.msk.bf16.mxu0 %vm1833_vm0, %v1832_v0  ;;  %vm546_vm2 = vcmask 64512   ;;  %vm610_vm3 = vcmask 1043456   ;;  %v655_v52 = vld [vmem:[%s2226_s4] sm:$0xf]  ;;  %vm1306_vm4 = vcmask 523264  }
  0x3c   : > { %1545 = vmatpush3.bf16.msra.mxu1 %v1709_v1  ;;  %s1836_s22 = smov 88   ;;  %s1838_s17 = smov 56   ;;  %v819_v53 = vsel %vm610_vm3, %v655_v52, 0  ;;  %v1480_v54 = vld [vmem:[%s2226_s4 + $0x4] sm:$0xf] }
  0x3d   : > { %s1470_s14 = sshll.u32 %s2004_s27, 3  ;;  %1546 = vmatprep.subr.bf16.mxu1 %v1832_v0  ;;  %s464_s21 = scalar_lea.vmem %s2223_s1, %s2004_s27  ;;  %v773_v55 = vsel %vm610_vm3, %v1480_v54, 0 }
  0x3e   : > { %v2051_v17 = vld [vmem:[%s464_s21] ss:$0 sm:$0xff]  ;;  %s1837_s27 = smov 64   ;;  %s1839_s24 = smov 112  }
  0x3f   : > { %s461_s23 = scalar_lea.vmem %s2253_s0, %s1470_s14  ;;  %s1834_s14 = smov 120  }
  0x40   : > { %v2019_v3 = vld [vmem:[%s461_s23] sm:$0xff]  ;;  %1547 = vmatpush3.bf16.msra.mxu1 %v1710_v2  ;;  %s1840_s30 = smov 80   ;;  %s1841_s23 = smov 72  }
  0x41   : > { %v468_v4 = vpack.c.bf16 %v2019_v3, %v2019_v3  ;;  %1552 = vmatprep.subr.bf16.mxu1 %v1832_v0  ;;  %s1842_s15 = smov 104   ;;  %s1843_s21 = smov 48  }
  0x42   : > { %p2254_p9 = scmp.ne.s32.totalorder %s2246_s18, 0 }
  0x43   : > { %1549 = vmatmul.mubr.msk.bf16.vlgmr.msra.gmra.mrb[0].mxu1 %vm492_vm1, %v468_v4 }
  0x44   : > { %1554 = vmatprep.mubr.msk.bf16.mxu1 %vm1833_vm0, %v1832_v0 }
 0x116   : > { %v530_v6 = vpop.f32.mrb[0].mxu1 }
 0x117   : > { %v531_v7 = vadd.f32 %v1471_v5, %v530_v6  ;;  %v1550_v8 = vpop.f32.mrb[1].mxu1 }
 0x118   : > { %v533_v9 = vpop.f32.mrb[2].mxu1 }
 0x119   : > { %v2031_v10 = vpack.c.bf16 %v531_v7, %v531_v7  ;;  %v1551_v11 = vpop.f32.mrb[3].mxu1 }
 0x11b   : > { %656 = vrot.lane.b32.xlu1 %v2031_v10, %s1834_s14  ;;  %544 = vrot.lane.b32.xlu0 %v2031_v10, %s1835_s20  ;;  %s1506_s14 = sshll.u32 %s1937_s29, 7  ;;  %s1845_s29 = smov [#allocation5]  }
 0x11c   : > { %s2179_s0 = scalar_lea.hbm %s2235_s13, %s1506_s14 }
 0x11f   : > { %658 = vrot.lane.b32.xlu0 %v2031_v10, %s1836_s22 }
 0x18d   : > { %v545_v12 = vpop.permute.xlu0 %544  ;;  %v657_v16 = vpop.permute.xlu1 %656 }
 0x18e   : > { %v551_v13 = vsel %vm546_vm2, %v545_v12, 0 }
 0x18f   : > { %1553 = vmatpush3.bf16.xpose.msra.mxu1 %v551_v13 }
 0x190   : > { %1564 = vmatprep.subr.bf16.mxu1 %v1832_v0 }
 0x191   : > { %v659_v14 = vpop.permute.xlu0 %658 }
 0x192   : > { %v664_v15 = vsel %vm546_vm2, %v659_v14, 0 }
 0x196   : > { %1555 = vmatmul.mubr.msk.bf16.vlgmr.msra.gmra.mrb[4].mxu1 %vm546_vm2, %v2031_v10 }
 0x197   : > { %1565 = vmatpush3.bf16.xpose.msra.mxu1 %v664_v15  ;;  %1566 = vmatprep.mubr.msk.bf16.mxu1 %vm1833_vm0, %v1832_v0 }
 0x198   : > { %1576 = vmatprep.subr.bf16.mxu1 %v1832_v0 }
 0x19e   : > { %1567 = vmatmul.mubr.msk.bf16.vlgmr.msra.gmra.mrb[8].mxu1 %vm546_vm2, %v657_v16 }
 0x19f   : > { %1578 = vmatprep.mubr.msk.bf16.mxu1 %vm1833_vm0, %v1832_v0  ;;  %1577 = vmatpush3.bf16.msra.mxu1 %v773_v55 }
 0x1a0   : > { %1588 = vmatprep.subr.bf16.mxu1 %v1832_v0 }
 0x269   : > { %v587_v18 = vpop.f32.mrb[4].mxu1 }
 0x26a   : > { %v588_v19 = vadd.f32 %v2051_v17, %v587_v18  ;;  %v1556_v20 = vpop.f32.mrb[5].mxu1 }
 0x26b   : > { %v590_v21 = vpop.f32.mrb[6].mxu1 }
 0x26c   : > { %v1557_v22 = vpop.f32.mrb[7].mxu1  ;;  %v593_v23 = vsel %vm546_vm2, %v588_v19, -inf }
 0x26d   : > { %594 = vmax.xlane.f32.xlu1 %v593_v23 }
 0x271   : > { %v700_v24 = vpop.f32.mrb[8].mxu1 }
 0x272   : > { %v701_v25 = vadd.f32 %v2051_v17, %v700_v24  ;;  %v1568_v26 = vpop.f32.mrb[9].mxu1 }
 0x273   : > { %v703_v27 = vpop.f32.mrb[10].mxu1 }
 0x274   : > { %v1569_v28 = vpop.f32.mrb[11].mxu1  ;;  %v706_v29 = vsel %vm546_vm2, %v701_v25, -inf }
 0x275   : > { %707 = vmax.xlane.f32.xlu0 %v706_v29 }
 0x2fa   : > { %v595_v30 = vpop.xlane.xlu1 %594 }
 0x2fb   : > { %v596_v31 = vsub.f32 %v588_v19, %v595_v30 }
 0x2fd   : > { %v597_v32 = vmul.f32 1.442695, %v596_v31 }
 0x2ff   : > { %1717 = vpow2.f32 %v597_v32 }
 0x302   : > { %v708_v33 = vpop.xlane.xlu0 %707 }
 0x303   : > { %v709_v34 = vsub.f32 %v701_v25, %v708_v33 }
 0x305   : > { %v710_v35 = vmul.f32 1.442695, %v709_v34 }
 0x307   : > { %1719 = vpow2.f32 %v710_v35 }
 0x309   : > { %v1718_v36 = vpop.eup %1717 }
 0x30a   : > { %v599_v37 = vsel %vm546_vm2, %v1718_v36, 0.0 }
 0x30b   : > { %600 = vadd.xlane.f32.xlu0 %v599_v37 }
 0x311   : > { %v1720_v38 = vpop.eup %1719 }
 0x312   : > { %v712_v39 = vsel %vm546_vm2, %v1720_v38, 0.0 }
 0x313   : > { %713 = vadd.xlane.f32.xlu1 %v712_v39 }
 0x321   : > { %605 = vrot.lane.b32.xlu0 %v2031_v10, %s1837_s27 }
 0x324   : > { %718 = vrot.lane.b32.xlu1 %v2031_v10, %s1838_s17 }
 0x325   : > { %861 = vrot.lane.b32.xlu0 %v2031_v10, %s1839_s24  ;;  %s1844_s24 = smov 40  }
 0x328   : > { %863 = vrot.lane.b32.xlu1 %v2031_v10, %s1840_s30 }
 0x398   : > { %v601_v40 = vpop.xlane.xlu0 %600 }
 0x399   : > { %1721 = vrcp.f32 %v601_v40 }
 0x39c   : > { %v606_v41 = vpop.permute.xlu0 %605 }
 0x39d   : > { %v612_v42 = vsel %vm610_vm3, %v606_v41, 0 }
 0x39e   : > { %1559 = vmatpush3.bf16.msra.mxu0 %v612_v42 }
 0x39f   : > { %1570 = vmatprep.subr.bf16.mxu0 %v1832_v0 }
 0x3a0   : > { %v714_v43 = vpop.xlane.xlu1 %713  ;;  %v862_v6 = vpop.permute.xlu0 %861 }
 0x3a1   : > { %1723 = vrcp.f32 %v714_v43 }
 0x3a3   : > { %v1722_v44 = vpop.eup %1721 }
 0x3a4   : > { %v603_v45 = vmul.f32 %v1722_v44, %v1718_v36  ;;  %v719_v46 = vpop.permute.xlu1 %718 }
 0x3a5   : > { %v724_v48 = vsel %vm610_vm3, %v719_v46, 0 }
 0x3a6   : > { %v604_v47 = vpack.c.bf16 %v603_v45, %v603_v45 }
 0x3a8   : > { %1561 = vmatmul.mubr.msk.bf16.vlgmr.msra.gmra.mrb[0].mxu0 %vm546_vm2, %v604_v47  ;;  %v864_v61 = vpop.permute.xlu1 %863 }
 0x3a9   : > { %1571 = vmatpush3.bf16.msra.mxu0 %v724_v48  ;;  %1572 = vmatprep.mubr.msk.bf16.mxu0 %vm1833_vm0, %v1832_v0  ;;  %v869_v4 = vsel %vm546_vm2, %v864_v61, 0 }
 0x3aa   : > { %1582 = vmatprep.subr.bf16.mxu0 %v1832_v0 }
 0x3ab   : > { %v1724_v49 = vpop.eup %1723 }
 0x3ac   : > { %v716_v50 = vmul.f32 %v1724_v49, %v1720_v38  ;;  %v1485_v38 = vld [vmem:[%s2226_s4 + $0x8] sm:$0xf] }
 0x3ad   : > { %v978_v39 = vsel %vm610_vm3, %v1485_v38, 0 }
 0x3ae   : > { %v717_v51 = vpack.c.bf16 %v716_v50, %v716_v50 }
 0x3b0   : > { %1573 = vmatmul.mubr.msk.bf16.vlgmr.msra.gmra.mrb[4].mxu0 %vm546_vm2, %v717_v51 }
 0x3b1   : > { %1584 = vmatprep.mubr.msk.bf16.mxu0 %vm1833_vm0, %v1832_v0  ;;  %1583 = vmatpush3.bf16.msra.mxu0 %v819_v53 }
 0x3b2   : > { %1594 = vmatprep.subr.bf16.mxu0 %v1832_v0 }
 0x47b   : > { %v648_v56 = vpop.f32.mrb[0].mxu0 }
 0x47c   : > { %v654_v57 = vpack.c.bf16 %v648_v56, %v648_v56  ;;  %v1562_v58 = vpop.f32.mrb[1].mxu0 }
 0x47d   : > { %v651_v59 = vpop.f32.mrb[2].mxu0 }
 0x47e   : > { %v1563_v60 = vpop.f32.mrb[3].mxu0  ;;  %1585 = vmatmul.mubr.msk.bf16.vlgmr.msra.gmra.mrb[8].mxu0 %vm546_vm2, %v654_v57  ;;  %v1489_v57 = vld [vmem:[%s2226_s4 + $0xc] sm:$0xf] }
 0x47f   : > { %1596 = vmatprep.mubr.msk.bf16.mxu0 %vm1833_vm0, %v1832_v0 }
 0x483   : > { %v760_v62 = vpop.f32.mrb[4].mxu0 }
 0x484   : > { %v766_v63 = vpack.c.bf16 %v760_v62, %v760_v62  ;;  %v1574_v1 = vpop.f32.mrb[5].mxu0 }
 0x485   : > { %v763_v2 = vpop.f32.mrb[6].mxu0 }
 0x486   : > { %v1575_v5 = vpop.f32.mrb[7].mxu0  ;;  %1579 = vmatmul.mubr.msk.bf16.vlgmr.msra.gmra.mrb[12].mxu1 %vm546_vm2, %v766_v63 }
 0x487   : > { %1589 = vmatpush3.bf16.xpose.msra.mxu1 %v869_v4  ;;  %1590 = vmatprep.mubr.msk.bf16.mxu1 %vm1833_vm0, %v1832_v0 }
 0x488   : > { %1600 = vmatprep.subr.bf16.mxu1 %v1832_v0 }
 0x48e   : > { %1591 = vmatmul.mubr.msk.bf16.vlgmr.msra.gmra.mrb[16].mxu1 %vm546_vm2, %v862_v6 }
 0x48f   : > { %1602 = vmatprep.mubr.msk.bf16.mxu1 %vm1833_vm0, %v1832_v0  ;;  %1601 = vmatpush3.bf16.msra.mxu1 %v978_v39 }
 0x490   : > { %1612 = vmatprep.subr.bf16.mxu1 %v1832_v0 }
 0x551   : > { %v855_v7 = vpop.f32.mrb[8].mxu0 }
 0x552   : > { %v1586_v8 = vpop.f32.mrb[9].mxu0 }
 0x553   : > { %v858_v9 = vpop.f32.mrb[10].mxu0 }
 0x554   : > { %v1587_v11 = vpop.f32.mrb[11].mxu0 }
 0x555   : > { %v1711_v11 = vld [vmem:[#allocation2] sm:$0xff]  }
 0x559   : > { %v809_v12 = vpop.f32.mrb[12].mxu1 }
 0x55a   : > { %v2094_v13 = vadd.f32 %v855_v7, %v809_v12  ;;  %v1580_v14 = vpop.f32.mrb[13].mxu1  ;;  %v1712_v12 = vld [vmem:[#allocation2 + $0x8] sm:$0xff]  }
 0x55b   : > { %v812_v15 = vpop.f32.mrb[14].mxu1  ;;  %v1714_v14 = vld [vmem:[%s2231_s9 + $0x8] sm:$0xff]  }
 0x55c   : > { %v1581_v16 = vpop.f32.mrb[15].mxu1 }
 0x561   : > { %v905_v18 = vpop.f32.mrb[16].mxu1 }
 0x562   : > { %v906_v19 = vadd.f32 %v2051_v17, %v905_v18  ;;  %v1592_v20 = vpop.f32.mrb[17].mxu1 }
 0x563   : > { %v908_v21 = vpop.f32.mrb[18].mxu1 }
 0x564   : > { %v1593_v22 = vpop.f32.mrb[19].mxu1  ;;  %v911_v23 = vsel %vm546_vm2, %v906_v19, -inf }
 0x565   : > { %912 = vmax.xlane.f32.xlu1 %v911_v23  ;;  %v1492_v23 = vld [vmem:[%s2228_s6] ss:$0 sm:$0xff] }
 0x576   : > { %1023 = vrot.lane.b32.xlu1 %v2031_v10, %s1841_s23  ;;  %s455_s23 = sand.u32 1, %s1819_s26  }
 0x577   : > { %s1469_s27 = sshll.u32 %s455_s23, 3  ;;  %s1370_s17 = scalar_lea.sflag [#allocation4], %s455_s23 }
 0x578   : > { %s457_s20 = scalar_lea.vmem [#allocation5], %s1469_s27  ;;  %s1765_s27 = sshll.u32 %s1845_s29, 4  ;;  %s1766_s27 = int_to_ptr.vmem [resolvable:$false] %s1765_s27 }
 0x579   : > { %s1383_s22 = sshll.u32 %s457_s20, 4  ;;  %s1767_s30 = scalar_lea.vmem %s1766_s27, 256  ;;  %s2181_s22 = int_to_ptr.vmem [resolvable:$true] %s1383_s22 }
 0x57a   : > { %1021 = vrot.lane.b32.xlu1 %v2031_v10, %s1842_s15  ;;  %p1768_p2 = scmp.lt.s32.totalorder %s2181_s22, %s1766_s27 }
 0x5f2   : > { %v913_v24 = vpop.xlane.xlu1 %912 }
 0x5f3   : > { %v914_v25 = vsub.f32 %v906_v19, %v913_v24  ;;  %v1491_v19 = vld [vmem:[%s2227_s5] ss:$0 sm:$0xff] }
 0x5f5   : > { %v915_v26 = vmul.f32 1.442695, %v914_v25 }
 0x5f6   : > { %v1024_v34 = vpop.permute.xlu1 %1023 }
 0x5f7   : > { %1725 = vpow2.f32 %v915_v26  ;;  %v1029_v36 = vsel %vm546_vm2, %v1024_v34, 0 }
 0x5fa   : > { %v1022_v37 = vpop.permute.xlu1 %1021 }
 0x601   : > { %v1726_v27 = vpop.eup %1725 }
 0x602   : > { %v917_v28 = vsel %vm546_vm2, %v1726_v27, 0.0 }
 0x603   : > { %918 = vadd.xlane.f32.xlu0 %v917_v28  ;;  %v1493_v28 = vld [vmem:[%s2230_s8] ss:$0 sm:$0xff] }
 0x619   : > { %923 = vrot.lane.b32.xlu0 %v2031_v10, %s1843_s21 }
 0x690   : > { %v919_v29 = vpop.xlane.xlu0 %918 }
 0x691   : > { %1727 = vrcp.f32 %v919_v29 }
 0x694   : > { %v924_v30 = vpop.permute.xlu0 %923 }
 0x695   : > { %v929_v31 = vsel %vm610_vm3, %v924_v30, 0 }
 0x696   : > { %1595 = vmatpush3.bf16.msra.mxu0 %v929_v31 }
 0x697   : > { %1606 = vmatprep.subr.bf16.mxu0 %v1832_v0 }
 0x69b   : > { %v1728_v32 = vpop.eup %1727 }
 0x69c   : > { %v921_v33 = vmul.f32 %v1728_v32, %v1726_v27  ;;  %v1715_v27 = vld [vmem:[%s2231_s9 + $0x10] sm:$0xff]  }
 0x69e   : > { %v922_v35 = vpack.c.bf16 %v921_v33, %v921_v33 }
 0x6a0   : > { %1597 = vmatmul.mubr.msk.bf16.vlgmr.msra.gmra.mrb[12].mxu0 %vm546_vm2, %v922_v35 }
 0x6a1   : > { %1607 = vmatpush3.bf16.xpose.msra.mxu0 %v1029_v36  ;;  %1608 = vmatprep.mubr.msk.bf16.mxu0 %vm1833_vm0, %v1832_v0 }
 0x6a2   : > { %1618 = vmatprep.subr.bf16.mxu0 %v1832_v0 }
 0x6a8   : > { %1609 = vmatmul.mubr.msk.bf16.vlgmr.msra.gmra.mrb[16].mxu0 %vm546_vm2, %v1022_v37 }
 0x6a9   : > { %1620 = vmatprep.mubr.msk.bf16.mxu0 %vm1833_vm0, %v1832_v0 }
 0x773   : > { %v965_v40 = vpop.f32.mrb[12].mxu0 }
 0x774   : > { %v971_v41 = vpack.c.bf16 %v965_v40, %v965_v40  ;;  %v1598_v42 = vpop.f32.mrb[13].mxu0 }
 0x775   : > { %v968_v43 = vpop.f32.mrb[14].mxu0  ;;  %v1503_v42 = vld [vmem:[%s2233_s11] ss:$0 sm:$0xff] }
 0x776   : > { %v1599_v44 = vpop.f32.mrb[15].mxu0  ;;  %1603 = vmatmul.mubr.msk.bf16.vlgmr.msra.gmra.mrb[20].mxu1 %vm546_vm2, %v971_v41 }
 0x777   : > { %1614 = vmatprep.mubr.msk.bf16.mxu1 %vm1833_vm0, %v1832_v0  ;;  %v1504_v44 = vld [vmem:[%s2234_s12] ss:$0 sm:$0xff] }
 0x77b   : > { %v1065_v45 = vpop.f32.mrb[16].mxu0 }
 0x77c   : > { %v1066_v46 = vadd.f32 %v2051_v17, %v1065_v45  ;;  %v1610_v47 = vpop.f32.mrb[17].mxu0 }
 0x77d   : > { %v1068_v48 = vpop.f32.mrb[18].mxu0 }
 0x77e   : > { %v1611_v49 = vpop.f32.mrb[19].mxu0  ;;  %v1071_v50 = vsel %vm546_vm2, %v1066_v46, -inf }
 0x77f   : > { %1072 = vmax.xlane.f32.xlu0 %v1071_v50 }
 0x795   : > { %1083 = vrot.lane.b32.xlu0 %v2031_v10, %s1844_s24  ;;  %v1138_v10 = vsel %vm610_vm3, %v1489_v57, 0  ;;  %s1761_s24 = scalar_lea.vmem %s2181_s22, 128 }
 0x796   : > { %1619 = vmatpush3.bf16.msra.mxu0 %v1138_v10  ;;  %p1762_p6 = scmp.ne.s32.totalorder %s2181_s22, %s1761_s24  ;;  %p1769_p3 = scmp.lt.s32.totalorder %s1767_s30, %s1761_s24 }
 0x797   : > { %1632 = vmatprep.subr.bf16.mxu0 %v1832_v0 }
 0x798   : > { %p1763_p10 = pnand %p1762_p6, %p2254_p9  ;;  %p1770_p4 = por %p1769_p3, %p1768_p2 }
 0x79a   : > { %p1764_p12 = pneg %p1763_p10 }
 0x79c   : > { %p1771_p7 = pnand %p1770_p4, %p1764_p12 }
 0x80c   : > { %v1073_v51 = vpop.xlane.xlu0 %1072 }
 0x80d   : > { %v1074_v52 = vsub.f32 %v1066_v46, %v1073_v51 }
 0x80f   : > { %v1075_v53 = vmul.f32 1.442695, %v1074_v52 }
 0x810   : > { %v1084_v54 = vpop.permute.xlu0 %1083 }
 0x811   : > { %1729 = vpow2.f32 %v1075_v53  ;;  %v1089_v55 = vsel %vm610_vm3, %v1084_v54, 0 }
 0x812   : > { %1613 = vmatpush3.bf16.msra.mxu1 %v1089_v55 }
 0x813   : > { %1624 = vmatprep.subr.bf16.mxu1 %v1832_v0 }
 0x81b   : > { %v1730_v17 = vpop.eup %1729 }
 0x81c   : > { %v1077_v56 = vsel %vm546_vm2, %v1730_v17, 0.0 }
 0x81d   : > { %1078 = vadd.xlane.f32.xlu1 %v1077_v56 }
 0x849   : > { %v1014_v58 = vpop.f32.mrb[20].mxu1 }
 0x84a   : > { %v1020_v59 = vadd.f32 %v1014_v58, %v2094_v13  ;;  %v1604_v60 = vpop.f32.mrb[21].mxu1  ;;  %v1713_v13 = vld [vmem:[%s2231_s9] sm:$0xff]  }
 0x84b   : > { %v1017_v61 = vpop.f32.mrb[22].mxu1 }
 0x84c   : > { %v1605_v62 = vpop.f32.mrb[23].mxu1 }
 0x8aa   : > { %v1079_v63 = vpop.xlane.xlu1 %1078 }
 0x8ab   : > { %1731 = vrcp.f32 %v1079_v63 }
 0x8b5   : > { %v1732_v1 = vpop.eup %1731 }
 0x8b6   : > { %v1081_v2 = vmul.f32 %v1732_v1, %v1730_v17 }
 0x8b8   : > { %v1082_v4 = vpack.c.bf16 %v1081_v2, %v1081_v2 }
 0x8ba   : > { %1615 = vmatmul.mubr.msk.bf16.vlgmr.msra.gmra.mrb[24].mxu1 %vm546_vm2, %v1082_v4 }
 0x8bb   : > { %1628 = vmatprep.mubr.msk.bf16.mxu1 %vm1833_vm0, %v1832_v0  ;;  %1625 = vmatpush3.bf16.msra.mxu1 %v1711_v11 }
 0x8bc   : > { %1626 = vmatprep.subr.bf16.mxu1 %v1832_v0 }
 0x8bf   : > { %1627 = vmatpush3.bf16.msra.mxu1 %v1712_v12 }
 0x98d   : > { %v1125_v5 = vpop.f32.mrb[24].mxu1 }
 0x98e   : > { %v1131_v6 = vpack.c.bf16 %v1125_v5, %v1125_v5  ;;  %v1616_v7 = vpop.f32.mrb[25].mxu1 }
 0x98f   : > { %v1128_v8 = vpop.f32.mrb[26].mxu1 }
 0x990   : > { %v1617_v9 = vpop.f32.mrb[27].mxu1  ;;  %1621 = vmatmul.mubr.msk.bf16.vlgmr.msra.gmra.mrb[20].mxu0 %vm546_vm2, %v1131_v6 }
 0x991   : > { %1640 = vmatprep.mubr.msk.bf16.mxu0 %vm1833_vm0, %v1832_v0  ;;  %1633 = vmatpush3.bf16.msra.mxu0 %v1713_v13 }
 0x992   : > { %1634 = vmatprep.subr.bf16.mxu0 %v1832_v0 }
 0x995   : > { %1635 = vmatpush3.bf16.msra.mxu0 %v1714_v14 }
 0x996   : > { %1636 = vmatprep.subr.bf16.mxu0 %v1832_v0 }
 0x999   : > { %1637 = vmatpush3.bf16.msra.mxu0 %v1715_v27 }
 0x99a   : > { %1638 = vmatprep.subr.bf16.mxu0 %v1832_v0  ;;  %v1497_v0 = vld [vmem:[%s2232_s10] ss:$0 sm:$0xff] }
 0xa63   : > { %v1174_v15 = vpop.f32.mrb[20].mxu0 }
 0xa64   : > { %v1180_v16 = vadd.f32 %v1174_v15, %v1020_v59  ;;  %v1622_v18 = vpop.f32.mrb[21].mxu0 }
 0xa65   : > { %v1177_v20 = vpop.f32.mrb[22].mxu0 }
 0xa66   : > { %v1181_v21 = vadd.f32 %v1180_v16, %v2019_v3  ;;  %v1623_v22 = vpop.f32.mrb[23].mxu0  ;;  %v1716_v3 = vld [vmem:[%s2231_s9 + $0x18] sm:$0xff]  }
 0xa67   : > { %1639 = vmatpush3.bf16.msra.mxu0 %v1716_v3 }
 0xa68   : > { %v1189_v24 = vmul.f32 %v1491_v19, %v1181_v21 }
 0xa6a   : > { %v1197_v25 = vadd.f32 %v1492_v23, %v1189_v24 }
 0xa6c   : > { %v1198_v26 = vpack.c.bf16 %v1197_v25, %v1197_v25 }
 0xa6e   : > { %1629 = vmatmul.mubr.msk.bf16.vlgmr.msra.gmra.mrb[28].mxu1 %vm492_vm1, %v1198_v26 }
 0xb41   : > { %v1259_v29 = vpop.f32.mrb[28].mxu1 }
 0xb42   : > { %v1260_v30 = vadd.f32 %v1493_v28, %v1259_v29  ;;  %v1630_v31 = vpop.f32.mrb[29].mxu1 }
 0xb43   : > { %v1262_v32 = vpop.f32.mrb[30].mxu1 }
 0xb44   : > { %v1265_v33 = vmax.f32 %v1260_v30, 0.0  ;;  %v1631_v34 = vpop.f32.mrb[31].mxu1 }
 0xb46   : > { %v1266_v35 = vpack.c.bf16 %v1265_v33, %v1265_v33 }
 0xb48   : > { %1641 = vmatmul.mubr.msk.bf16.vlgmr.msra.gmra.mrb[24].mxu0 %vm1306_vm4, %v1266_v35 }
 0xc1b   : > { %v1344_v36 = vpop.f32.mrb[24].mxu0 }
 0xc1c   : > { %v1345_v37 = vadd.f32 %v1497_v0, %v1344_v36  ;;  %v1642_v38 = vpop.f32.mrb[25].mxu0 }
 0xc1d   : > { %v1347_v39 = vpop.f32.mrb[26].mxu0 }
 0xc1e   : > { %v1350_v40 = vmax.f32 %v1345_v37, 0.0  ;;  %v1643_v41 = vpop.f32.mrb[27].mxu0 }
 0xc20   : > { %v1351_v43 = vadd.f32 %v1350_v40, %v1197_v25 }
 0xc22   : > { %v1359_v45 = vmul.f32 %v1503_v42, %v1351_v43 }
 0xc24   : > { %v1367_v46 = vadd.f32 %v1504_v44, %v1359_v45 }
 0xc26   : > { %1368 = vst.msk [vmem:[%s457_s20] sm:$0xff] %vm492_vm1, %v1367_v46 }
 0xc27   : > { %1774 = shalt.err (!%p1771_p7)
}
 0xc28   : > { %s1775_s23 = scalar_lea.hbm %s2179_s0, 128  ;;  %s1779_s20 = scalar_lea.hbm %s2235_s13, 256 }
 0xc29   : > { %p1776_p8 = scmp.ne.s32.totalorder %s2179_s0, %s1775_s23  ;;  %p1780_p1 = scmp.lt.u32.totalorder %s2179_s0, %s2235_s13 }
 0xc2a   : > { %p1781_p0 = scmp.lt.u32.totalorder %s1779_s20, %s1775_s23  ;;  %p1783_p6 = scmp.lt.u32.totalorder %s1775_s23, %s2179_s0 }
 0xc2b   : > { %p1777_p11 = pnand %p1776_p8, %p2254_p9 }
 0xc2c   : > { %p1782_p5 = por %p1781_p0, %p1780_p1 }
 0xc2d   : > { %p1778_p13 = pneg %p1777_p11 }
 0xc2e   : > { %p1784_p10 = por %p1783_p6, %p1782_p5 }
 0xc30   : > { %p1785_p12 = pnand %p1784_p10, %p1778_p13 }
 0xc32   : > { %1788 = shalt.err (!%p1785_p12)
}
 0xc33   : > { %1648 = dma.vmem_to_hbm [thread:$0]  (%p2254_p9), %s2181_s22, 128, %s2179_s0, %s1370_s17  }
 0xc34 PF: > { %p1660_p2 = scmp.ge.s32.totalorder %s1827_s28, 2  ;;  %s1395_s24 = sand.u32 1, %s1815_s25  }
 0xc35   : > { %p2255_p3 = scmp.ne.s32.totalorder %s2247_s19, 0  ;;  %s1396_s29 = scalar_lea.sflag [#allocation4], %s1395_s24 }
 0xc37   : > { %p1655_p4 = pnand %p1660_p2, %p2255_p3 }
 0xc39   : > { %1810 = dma.done.wait (!%p1655_p4), %s1396_s29, 128  }
 0xc3a   : > { %1812 = vsyncadd (!%p1655_p4), %s1396_s29, 4294967168  ;;  %s2256_s28 = sld [smem:[#allocation9_spill]]  ;;  %s2257_s27 = sld [smem:[#allocation8_spill]] }
 0xc3b   : > { %s2258_s30 = sld [smem:[#allocation10_spill]]  ;;  %s2259_s25 = smov %s1819_s26 }
 0xc40   : > { %p24_p7 = scmp.ge.s32.totalorder %s2256_s28, 4   ;;  %s2260_s26 = smov %s2257_s27 }
 0xc41   : > { %s2261_s27 = smov %s2258_s30 }
 0xc42   :  { %26 = sbr.rel (!%p24_p7) target bundleno = 6 (0x6), region = 118 }
 0xc49   :  { %1401 = vsyncpa [#allocation3], 1 }
 0xc4a   :  { %1403 = vsyncpa [#allocation3 + $0x1], 1 }
 0xc4b   :  { %1404 = vsyncpa [#allocation4], 1 }
 0xc4c   :  { %1406 = vsyncpa [#allocation4 + $0x1], 1 }

</bundles_post_ra>
